<compile_context>
chip_gen: v5e
topology: v5e:2x2
jax: 0.10.0
libtpu: 0.0.40
codegen_flags: <defaults>
</compile_context>

<pallas_src>
import functools
import math

import jax
import jax.numpy as jnp
from jax import lax
from jax.experimental import pallas as pl
from jax.experimental.pallas import tpu as pltpu

_GROUP_ROWS = 64       # rows folded per inner-loop step (8 f32 vregs / operand)
_MAX_TILE_ROWS = 2048  # 1 MiB f32 per input block


def _cdiv(a, b):
    return -(-a // b)


def _round_up(a, b):
    return _cdiv(a, b) * b


def _choose_tiling(n_rows):
    """Returns (rows_per_tile, n_par, n_chunks) with n_par*n_chunks == cdiv(n_rows, rows_per_tile).

    Guarantees every grid step maps to an in-range block index (only the
    globally-last block can be partial), while giving v7x's two TensorCores a
    'parallel' axis whenever there are at least two blocks of work.
    """
    if n_rows <= 2 * _GROUP_ROWS:
        # Tiny problem: single block.
        return max(8, _round_up(n_rows, 8)), 1, 1
    if n_rows <= _MAX_TILE_ROWS:
        # Exactly two blocks, one per core.
        return _round_up(_cdiv(n_rows, 2), _GROUP_ROWS), 2, 1
    # Large: pick a tile size (multiple of _GROUP_ROWS in [MAX/2, MAX]) whose
    # block count is even so both cores get the same number of chunks.
    for rpt in range(_MAX_TILE_ROWS, _MAX_TILE_ROWS // 2 - 1, -_GROUP_ROWS):
        nb = _cdiv(n_rows, rpt)
        if nb % 2 == 0:
            return rpt, 2, nb // 2
    return _MAX_TILE_ROWS, 1, _cdiv(n_rows, _MAX_TILE_ROWS)


def _bce_sum_kernel(x_ref, y_ref, out_ref, *, rows_per_tile, group_rows,
                    n_par, n_chunks, total_valid, needs_mask):
    """Accumulates sigmoid cross-entropy over one (rows_per_tile, 128) tile
    into a per-core (8, 128) f32 partial sum (resident across the chunk axis).
    """
    p = pl.program_id(0)
    c = pl.program_id(1)

    @pl.when(c == 0)
    def _init():
        out_ref[...] = jnp.zeros_like(out_ref)

    n_groups = rows_per_tile // group_rows
    sub = group_rows // 8
    zero = jnp.zeros((8, 128), jnp.float32)

    def xent(x_raw, y_raw):
        # Stable sigmoid cross-entropy, algebraically identical to the PyTorch
        #   xent = -[x*(labels - (x>=0)) - log(1 + exp(x - 2*x*(x>=0)))]
        #        =  max(x, 0) - x*labels + log(1 + exp(-|x|))
        x = x_raw.astype(jnp.float32)
        ax = jnp.abs(x)
        relu_x = 0.5 * (x + ax)                       # == max(x, 0), exact
        x_pos = jnp.where(y_raw >= 0.5, x, 0.0)       # == x * (label >= 0.5)
        return relu_x - x_pos + jnp.log(1.0 + jnp.exp(-ax))

    def fold(v):
        # Pure-VPU fold of a (group_rows, 128) tile into (8, 128).
        return v.reshape(sub, 8, 128).sum(axis=0)

    def fast_body(g, acc):
        r0 = pl.multiple_of(g * group_rows, group_rows)
        v = xent(x_ref[pl.ds(r0, group_rows), :],
                 y_ref[pl.ds(r0, group_rows), :])
        return acc + fold(v)

    if not needs_mask:
        out_ref[...] += lax.fori_loop(0, n_groups, fast_body, zero, unroll=True)
    else:
        # Only the globally-last block can contain padded / out-of-bounds rows.
        is_last = jnp.logical_and(p == n_par - 1, c == n_chunks - 1)
        base = (n_par * n_chunks - 1) * rows_per_tile * 128  # compile-time const

        @pl.when(jnp.logical_not(is_last))
        def _fast():
            out_ref[...] += lax.fori_loop(0, n_groups, fast_body, zero,
                                          unroll=True)

        @pl.when(is_last)
        def _masked():
            def masked_body(g, acc):
                r0 = pl.multiple_of(g * group_rows, group_rows)
                v = xent(x_ref[pl.ds(r0, group_rows), :],
                         y_ref[pl.ds(r0, group_rows), :])
                row = lax.broadcasted_iota(jnp.int32, v.shape, 0)
                lane = lax.broadcasted_iota(jnp.int32, v.shape, 1)
                elem = base + (r0 + row) * 128 + lane
                v = jnp.where(elem < total_valid, v, 0.0)
                return acc + fold(v)

            out_ref[...] += lax.fori_loop(0, n_groups, masked_body, zero,
                                          unroll=False)


def bootstrapped_cross_entropy_loss(output, label, ratio=1.0 / 16):
    """JAX/Pallas equivalent of bootstrapped_cross_entopy_loss (void_pixels=None).

    Accepts f32 or bf16 inputs; no wrapper-side cast (the kernel upcasts
    in-register), and no wrapper-side pad unless numel % 128 != 0.
    """
    assert output.shape == label.shape
    total = int(math.prod(output.shape))

    # Mirrors the PyTorch K computation; due to the tuple-slicing quirk the
    # value of K >= 2 does not change the result (see note at top of file).
    K = int(output.shape[2] * output.shape[3] * ratio)
    del K

    x = output.reshape(-1)   # free reshape, original dtype
    y = label.reshape(-1)
    n_rows = _cdiv(total, 128)
    if n_rows * 128 != total:
        # Rare (numel not a multiple of 128): one pad pass; padded elements are
        # masked out inside the kernel, so the pad value is irrelevant.
        pad = n_rows * 128 - total
        x = jnp.pad(x, (0, pad))
        y = jnp.pad(y, (0, pad))
    x2 = x.reshape(n_rows, 128)
    y2 = y.reshape(n_rows, 128)

    rows_per_tile, n_par, n_chunks = _choose_tiling(n_rows)
    group_rows = _GROUP_ROWS if rows_per_tile % _GROUP_ROWS == 0 else rows_per_tile
    capacity = n_par * n_chunks * rows_per_tile * 128
    needs_mask = capacity != total

    kernel = functools.partial(
        _bce_sum_kernel,
        rows_per_tile=rows_per_tile,
        group_rows=group_rows,
        n_par=n_par,
        n_chunks=n_chunks,
        total_valid=total,
        needs_mask=needs_mask,
    )

    bytes_accessed = (x2.size * x2.dtype.itemsize + y2.size * y2.dtype.itemsize
                      + n_par * 8 * 128 * 4)
    cost = pl.CostEstimate(
        flops=8 * capacity,
        transcendentals=2 * capacity,
        bytes_accessed=bytes_accessed,
    )

    in_map = lambda p, c: (p * n_chunks + c, 0)  # contiguous rows per core
    partials = pl.pallas_call(
        kernel,
        out_shape=jax.ShapeDtypeStruct((n_par, 8, 128), jnp.float32),
        grid_spec=pltpu.PrefetchScalarGridSpec(
            num_scalar_prefetch=0,
            grid=(n_par, n_chunks),
            in_specs=[
                pl.BlockSpec((rows_per_tile, 128), in_map),
                pl.BlockSpec((rows_per_tile, 128), in_map),
            ],
            out_specs=pl.BlockSpec((None, 8, 128), lambda p, c: (p, 0, 0)),
        ),
        compiler_params=pltpu.CompilerParams(
            dimension_semantics=("parallel", "arbitrary"),
            vmem_limit_bytes=32 * 1024 * 1024,
        ),
        cost_estimate=cost,
    )(x2, y2)

    # Tiny final reduction in plain JAX. Mean-of-per-sample-means == global
    # mean because every sample has the same pixel count (void_pixels=None).
    return jnp.sum(partials) / jnp.float32(total)


def _reference(output, label):
    """Pure-JAX reference matching the PyTorch code's actual behavior."""
    x = output.astype(jnp.float32)
    y = label.astype(jnp.float32)
    labels = (y >= 0.5).astype(jnp.float32)
    gtz = (x >= 0.0).astype(jnp.float32)
    loss_val = x * (labels - gtz) - jnp.log(1.0 + jnp.exp(x - 2.0 * x * gtz))
    xent = -loss_val
    B = x.shape[0]
    per_sample = jnp.mean(xent.reshape(B, -1), axis=1)
    return jnp.mean(per_sample)


def _run_case(key, shape, dtype, rtol, atol):
    k1, k2 = jax.random.split(key)
    logits = (jax.random.normal(k1, shape, dtype=jnp.float32) * 3.0).astype(dtype)
    label = (jax.random.uniform(k2, shape, dtype=jnp.float32) > 0.5).astype(dtype)
    loss = jax.block_until_ready(
        bootstrapped_cross_entropy_loss(logits, label, ratio=1.0 / 16))
    ref = _reference(logits, label)
    assert jnp.allclose(loss, ref, rtol=rtol, atol=atol), (shape, dtype, loss, ref)


if __name__ == "__main__":
    key = jax.random.PRNGKey(0)
    ks = jax.random.split(key, 4)

    # 1) Main test: small, lane-aligned shape (single block, no masking).
    _run_case(ks[0], (2, 4, 16, 16), jnp.float32, rtol=1e-5, atol=1e-5)

    # 2) Ragged shape (numel % 128 != 0): exercises the pad + tail-mask path.
    _run_case(ks[1], (2, 1, 10, 10), jnp.float32, rtol=1e-5, atol=1e-5)

    # 3) bf16 inputs, two-core parallel split with a partial last block.
    _run_case(ks[2], (4, 3, 48, 48), jnp.bfloat16, rtol=1e-5, atol=1e-5)

    # 4) Larger aligned shape: two cores, full-size tiles, unrolled fast path.
    _run_case(ks[3], (2, 1, 512, 512), jnp.float32, rtol=1e-4, atol=1e-5)

    print("KERNEL_OK")
</pallas_src>

<mosaic_0001>
module attributes {stable_mosaic.version = 11 : i64} {
  func.func @_bce_sum_kernel(%arg0: i32, %arg1: i32, %arg2: memref<16x128xf32, #tpu.memory_space<vmem>>, %arg3: memref<16x128xf32, #tpu.memory_space<vmem>>, %arg4: memref<1x8x128xf32, #tpu.memory_space<vmem>>) attributes {dimension_semantics = [#tpu.dimension_semantics<parallel>, #tpu.dimension_semantics<arbitrary>], iteration_bounds = array<i64: 1, 1>, scalar_prefetch = 0 : i64, scratch_operands = 0 : i64, tpu.core_type = #tpu.core_type<tc>, window_params = [{transform_indices = @transform_0, window_bounds = array<i64: 16, 128>}, {transform_indices = @transform_1, window_bounds = array<i64: 16, 128>}, {transform_indices = @transform_2, window_bounds = array<i64: 1, 8, 128>}]} {
    %c0_i32 = arith.constant 0 : i32
    %0 = arith.cmpi eq, %arg1, %c0_i32 : i32
    %1 = arith.extui %0 : i1 to i32
    %c0_i32_0 = arith.constant 0 : i32
    %2 = arith.cmpi ne, %1, %c0_i32_0 : i32
    scf.if %2 {
      %cst_15 = arith.constant 0.000000e+00 : f32
      %35 = vector.broadcast %cst_15 : f32 to vector<8x128xf32>
      %c0_16 = arith.constant 0 : index
      %c0_17 = arith.constant 0 : index
      %c0_18 = arith.constant 0 : index
      %36 = vector.load %arg4[%c0_16, %c0_17, %c0_18] : memref<1x8x128xf32, #tpu.memory_space<vmem>>, vector<1x8x128xf32>
      %37 = vector.shape_cast %36 : vector<1x8x128xf32> to vector<8x128xf32>
      %38 = vector.shape_cast %35 : vector<8x128xf32> to vector<1x8x128xf32>
      tpu.vector_store %arg4[%c0_16, %c0_17, %c0_18], %38 {strides = array<i32>} : memref<1x8x128xf32, #tpu.memory_space<vmem>>, vector<1x8x128xf32>,
    } else {
    }
    %cst = arith.constant 0.000000e+00 : f32
    %3 = vector.broadcast %cst : f32 to vector<8x128xf32>
    %c0 = arith.constant 0 : index
    %c0_1 = arith.constant 0 : index
    %c0_2 = arith.constant 0 : index
    %4 = vector.load %arg4[%c0, %c0_1, %c0_2] : memref<1x8x128xf32, #tpu.memory_space<vmem>>, vector<1x8x128xf32>
    %5 = vector.shape_cast %4 : vector<1x8x128xf32> to vector<8x128xf32>
    %c0_i32_3 = arith.constant 0 : i32
    %c16_i32 = arith.constant 16 : i32
    %6 = arith.muli %c0_i32_3, %c16_i32 : i32
    %7 = tpu.assume_multiple %6, 16 : i32
    %8 = arith.index_cast %7 : i32 to index
    %c0_4 = arith.constant 0 : index
    %9 = vector.load %arg2[%8, %c0_4] : memref<16x128xf32, #tpu.memory_space<vmem>>, vector<16x128xf32>
    %10 = arith.index_cast %7 : i32 to index
    %c0_5 = arith.constant 0 : index
    %11 = vector.load %arg3[%10, %c0_5] : memref<16x128xf32, #tpu.memory_space<vmem>>, vector<16x128xf32>
    %12 = math.absf %9 : vector<16x128xf32>
    %13 = arith.addf %9, %12 : vector<16x128xf32>
    %cst_6 = arith.constant 5.000000e-01 : f32
    %14 = vector.broadcast %cst_6 : f32 to vector<16x128xf32>
    %15 = arith.mulf %14, %13 : vector<16x128xf32>
    %cst_7 = arith.constant 5.000000e-01 : f32
    %16 = vector.broadcast %cst_7 : f32 to vector<16x128xf32>
    %17 = arith.cmpf oge, %11, %16 : vector<16x128xf32>
    %cst_8 = arith.constant 0.000000e+00 : f32
    %18 = vector.broadcast %cst_8 : f32 to vector<16x128xf32>
    %19 = arith.select %17, %9, %18 : vector<16x128xi1>, vector<16x128xf32>
    %20 = arith.subf %15, %19 : vector<16x128xf32>
    %cst_9 = arith.constant 0.000000e+00 : f32
    %21 = vector.broadcast %cst_9 : f32 to vector<16x128xf32>
    %22 = arith.subf %21, %12 : vector<16x128xf32>
    %23 = math.exp %22 : vector<16x128xf32>
    %cst_10 = arith.constant 1.000000e+00 : f32
    %24 = vector.broadcast %cst_10 : f32 to vector<16x128xf32>
    %25 = arith.addf %24, %23 : vector<16x128xf32>
    %26 = math.log %25 : vector<16x128xf32>
    %27 = arith.addf %20, %26 : vector<16x128xf32>
    %28 = vector.shape_cast %27 : vector<16x128xf32> to vector<2x8x128xf32>
    %cst_11 = arith.constant dense<0.000000e+00> : vector<8x128xf32>
    %29 = vector.multi_reduction <add>, %28, %cst_11 [0] : vector<2x8x128xf32> to vector<8x128xf32>
    %30 = arith.addf %3, %29 : vector<8x128xf32>
    %c1_i32 = arith.constant 1 : i32
    %31 = arith.addf %5, %30 : vector<8x128xf32>
    %c0_12 = arith.constant 0 : index
    %c0_13 = arith.constant 0 : index
    %c0_14 = arith.constant 0 : index
    %32 = vector.load %arg4[%c0_12, %c0_13, %c0_14] : memref<1x8x128xf32, #tpu.memory_space<vmem>>, vector<1x8x128xf32>
    %33 = vector.shape_cast %32 : vector<1x8x128xf32> to vector<8x128xf32>
    %34 = vector.shape_cast %31 : vector<8x128xf32> to vector<1x8x128xf32>
    tpu.vector_store %arg4[%c0_12, %c0_13, %c0_14], %34 {strides = array<i32>} : memref<1x8x128xf32, #tpu.memory_space<vmem>>, vector<1x8x128xf32>,
    return
  }
  func.func @transform_0(%arg0: i32, %arg1: i32) -> (i32, i32) {
    %c1_i32 = arith.constant 1 : i32
    %0 = arith.muli %arg0, %c1_i32 : i32
    %1 = arith.addi %0, %arg1 : i32
    %c0_i32 = arith.constant 0 : i32
    %c0_i32_0 = arith.constant 0 : i32
    return %1, %c0_i32 : i32, i32
  }
  func.func @transform_1(%arg0: i32, %arg1: i32) -> (i32, i32) {
    %c1_i32 = arith.constant 1 : i32
    %0 = arith.muli %arg0, %c1_i32 : i32
    %1 = arith.addi %0, %arg1 : i32
    %c0_i32 = arith.constant 0 : i32
    %c0_i32_0 = arith.constant 0 : i32
    return %1, %c0_i32 : i32, i32
  }
  func.func @transform_2(%arg0: i32, %arg1: i32) -> (i32, i32, i32) {
    %c0_i32 = arith.constant 0 : i32
    %c0_i32_0 = arith.constant 0 : i32
    %c0_i32_1 = arith.constant 0 : i32
    return %arg0, %c0_i32, %c0_i32_0 : i32, i32, i32
  }
}

</mosaic_0001>

<bundles_post_ra>
// kernel: tpu_custom_call.1
= control target key start
LH: loop header
LB: loop body
LE: loop exit
PB: predicated region body
PF: predicated region fallthrough
CT: control target
= control target key end

     0   :  { %7 = vsyncpa [#allocation3], 0  ;;  %s235_s0 = inlined_call_operand.hbm [shape: f32[16,128], index: 0, kind: input, shape index: {}]   ;;  %s236_s1 = inlined_call_operand.hbm [shape: f32[16,128], index: 1, kind: input, shape index: {}]   ;;  %s237_s2 = inlined_call_operand.hbm [shape: f32[1,8,128], index: 2, kind: output, shape index: {}]  }
   0x1   :  { %8 = vsyncpa [#allocation6], 0 }
   0x2   :  { %9 = vsyncpa [#allocation4], 0  ;;  %s18_s11 = sshll.u32 %s235_s0, 4  ;;  %s206_s12 = smov [#allocation2]   ;;  %s19_s11 = int_to_ptr.hbm [resolvable:$true] %s18_s11 }
   0x3   :  { %s20_s13 = sshll.u32 %s206_s12, 4  ;;  %s35_s16 = sshll.u32 %s236_s1, 4  ;;  %s21_s13 = int_to_ptr.vmem [resolvable:$true] %s20_s13  ;;  %s36_s16 = int_to_ptr.hbm [resolvable:$true] %s35_s16 }
   0x4   :  { %s207_s17 = smov 128   ;;  %s208_s18 = smov 8  }
   0x5   :  { %26 = dma.hbm_to_vmem [thread:$0]  %s19_s11, 256, %s21_s13, [#allocation3], %s207_s17, %s207_s17, %s208_s18  }
   0x6   :  { %s209_s19 = smov [#allocation5]  }
   0x7   :  { %s37_s20 = sshll.u32 %s209_s19, 4  ;;  %s38_s20 = int_to_ptr.vmem [resolvable:$true] %s37_s20 }
   0x8   :  { %43 = dma.hbm_to_vmem [thread:$0]  %s36_s16, 256, %s38_s20, [#allocation6], %s207_s17, %s207_s17, %s208_s18  }
   0x9   :  { %200 = dma.done.wait [#allocation3], 256  }
   0xa   :  { %201 = vsyncadd [#allocation3], 4294967040 }
   0xb   :  { %202 = dma.done.wait [#allocation6], 256  }
   0xc   :  { %203 = vsyncadd [#allocation6], 4294967040  ;;  %v62_v0 = vld [vmem:[#allocation2] sm:$0xff]  ;;  %v63_v1 = vld [vmem:[#allocation2 + $0x8] sm:$0xff]  ;;  %s210_s0 = smov [#allocation7]   ;;  %s103_s23 = sshll.u32 %s237_s2, 4  ;;  %s104_s23 = int_to_ptr.hbm [resolvable:$true] %s103_s23 }
   0xd   :  { %v66_v2 = vand.u32 2147483647, %v62_v0  ;;  %v67_v3 = vand.u32 2147483647, %v63_v1  ;;  %v64_v8 = vld [vmem:[#allocation5] sm:$0xff]  ;;  %v65_v10 = vld [vmem:[#allocation5 + $0x8] sm:$0xff] }
   0xe   :  { %vm72_vm0 = vcmp.ge.f32.partialorder %v64_v8, 0.5  ;;  %vm73_vm1 = vcmp.ge.f32.partialorder %v65_v10, 0.5  ;;  %s101_s1 = sshll.u32 %s210_s0, 4  ;;  %s102_s1 = int_to_ptr.vmem [resolvable:$true] %s101_s1 }
   0xf   :  { %v78_v4 = vsub.f32 0.0, %v66_v2  ;;  %v79_v5 = vsub.f32 0.0, %v67_v3  ;;  %v68_v11 = vadd.f32 %v66_v2, %v62_v0  ;;  %v69_v13 = vadd.f32 %v67_v3, %v63_v1 }
  0x10   :  { %v74_v18 = vsel %vm72_vm0, %v62_v0, 0.0  ;;  %v75_v19 = vsel %vm73_vm1, %v63_v1, 0.0 }
  0x11   :  { %v80_v6 = vmul.f32 1.442695, %v78_v4  ;;  %v82_v7 = vmul.f32 1.442695, %v79_v5  ;;  %v70_v16 = vmul.f32 0.5, %v68_v11  ;;  %v71_v17 = vmul.f32 0.5, %v69_v13 }
  0x13   :  { %120 = vpow2.f32 %v80_v6  ;;  %v76_v20 = vsub.f32 %v70_v16, %v74_v18  ;;  %v77_v22 = vsub.f32 %v71_v17, %v75_v19 }
  0x14   :  { %122 = vpow2.f32 %v82_v7 }
  0x19   :  { %v121_v9 = vpop.eup %120 }
  0x1a   :  { %v123_v12 = vpop.eup %122  ;;  %v84_v14 = vadd.f32 1.0, %v121_v9 }
  0x1b   :  { %v85_v15 = vadd.f32 1.0, %v123_v12 }
  0x1c   :  { %124 = vlog2.f32 %v84_v14 }
  0x1d   :  { %126 = vlog2.f32 %v85_v15 }
  0x22   :  { %v125_v21 = vpop.eup %124 }
  0x23   :  { %v127_v23 = vpop.eup %126  ;;  %v87_v24 = vmul.f32 0.6931472, %v125_v21 }
  0x24   :  { %v89_v25 = vmul.f32 0.6931472, %v127_v23 }
  0x25   :  { %v90_v26 = vadd.f32 %v87_v24, %v76_v20 }
  0x26   :  { %v91_v27 = vadd.f32 %v89_v25, %v77_v22 }
  0x28   :  { %v92_v28 = vadd.f32 %v91_v27, %v90_v26 }
  0x2a   :  { %95 = vst [vmem:[#allocation7] sm:$0xff] %v92_v28 }
  0x2b   :  { %106 = dma.vmem_to_hbm [thread:$0]  %s102_s1, 128, %s104_s23, [#allocation4]  }
  0x2c   :  { %204 = dma.done.wait [#allocation4], 128  }
  0x2d   :  { %205 = vsyncadd [#allocation4], 4294967168 }
  0x2e   :  { %111 = vsyncpa [#allocation3], 1 }
  0x2f   :  { %112 = vsyncpa [#allocation6], 1 }
  0x30   :  { %113 = vsyncpa [#allocation4], 1 }

</bundles_post_ra>
